<compile_context>
chip_gen: v7x
topology: tpu7x:2x2x1
jax: 0.10.0
libtpu: 0.0.40
codegen_flags: <defaults>
</compile_context>

<pallas_src>
import jax
import jax.numpy as jnp
from jax.experimental import pallas as pl
from jax.experimental.pallas import tpu as pltpu


# ---------------------------------------------------------------------------
# Kernel 1: meta_net MLP + ctx shift for the whole batch in one grid step.
# ---------------------------------------------------------------------------
def meta_shift_kernel(im_ref, w1_ref, b1_ref, w2_ref, b2_ref, ctx_ref, out_ref):
    h = jnp.dot(im_ref[...], w1_ref[...], preferred_element_type=jnp.float32)
    h = jnp.maximum(h + b1_ref[...], 0.0)                                     # ReLU
    bias = jnp.dot(h, w2_ref[...], preferred_element_type=jnp.float32) + b2_ref[...]
    ctx_shifted = ctx_ref[...].astype(jnp.float32)[None, :, :] + bias[:, None, :]
    out_ref[...] = ctx_shifted.astype(out_ref.dtype)                          # (B, n_ctx, ctx_dim)


# ---------------------------------------------------------------------------
# Kernel 2: prompt assembly.  Grid = (class-tile, batch); out block is
# (TN, L, ctx_dim) with the batch dim squeezed.  Three direct segment stores.
# ---------------------------------------------------------------------------
def assemble_kernel(ctx_ref, prefix_ref, suffix_ref, out_ref):
    n_ctx = ctx_ref.shape[0]
    tn, _, ctx_dim = out_ref.shape

    out_ref[:, 0:1, :] = prefix_ref[...].astype(out_ref.dtype)                # SOS token
    out_ref[:, 1:1 + n_ctx, :] = jnp.broadcast_to(
        ctx_ref[...][None, :, :], (tn, n_ctx, ctx_dim)).astype(out_ref.dtype)  # context tokens
    out_ref[:, 1 + n_ctx:, :] = suffix_ref[...].astype(out_ref.dtype)         # class + EOS tokens


def _pick_class_tile(n_cls, L, suf_len, ctx_dim, out_bytes, param_bytes,
                     vmem_budget_bytes=24 * 1024 * 1024):
    """Largest class tile whose double-buffered blocks fit the VMEM budget."""
    per_cls = 2 * (L * ctx_dim * out_bytes + (1 + suf_len) * ctx_dim * param_bytes)
    tn = max(1, min(n_cls, vmem_budget_bytes // per_cls))
    return int(tn), int(per_cls)


def prompt_learner_forward(im_features, w1, b1, w2, b2, ctx, prefix, suffix,
                           ctx_only=False):
    B, vis_dim = im_features.shape
    hidden = w1.shape[1]
    n_ctx, ctx_dim = ctx.shape
    n_cls = prefix.shape[0]
    suf_len = suffix.shape[1]
    L = 1 + n_ctx + suf_len
    out_dtype = im_features.dtype

    # ---- meta-net MLP + ctx shift: one batched kernel, one grid step ----
    ctx_shifted = pl.pallas_call(
        meta_shift_kernel,
        out_shape=jax.ShapeDtypeStruct((B, n_ctx, ctx_dim), out_dtype),
        grid=(1,),
        in_specs=[
            pl.BlockSpec((B, vis_dim), lambda i: (0, 0)),
            pl.BlockSpec((vis_dim, hidden), lambda i: (0, 0)),
            pl.BlockSpec((1, hidden), lambda i: (0, 0)),
            pl.BlockSpec((hidden, ctx_dim), lambda i: (0, 0)),
            pl.BlockSpec((1, ctx_dim), lambda i: (0, 0)),
            pl.BlockSpec((n_ctx, ctx_dim), lambda i: (0, 0)),
        ],
        out_specs=pl.BlockSpec((B, n_ctx, ctx_dim), lambda i: (0, 0, 0)),
    )(im_features, w1, b1, w2, b2, ctx)

    if ctx_only:
        # Mirrors the module's `ctx_only=True` path: (B, n_ctx, ctx_dim).
        return ctx_shifted

    # ---- assembly: bandwidth-bound broadcast into (B, n_cls, L, ctx_dim) ----
    out_bytes = jnp.dtype(out_dtype).itemsize
    param_bytes = jnp.dtype(prefix.dtype).itemsize
    tn, per_cls = _pick_class_tile(n_cls, L, suf_len, ctx_dim, out_bytes, param_bytes)
    n_tiles = pl.cdiv(n_cls, tn)

    # Explicit scoped-VMEM request: double-buffered blocks plus headroom, capped so
    # it also fits v7x's 64 MiB physical VMEM (v5e/v6e have plenty).
    ctx_blk_bytes = 2 * n_ctx * ctx_dim * out_bytes
    needed = tn * per_cls + ctx_blk_bytes + (1 << 20)
    vmem_limit = int(min(48 * 2**20, max(32 * 2**20, 2 * needed)))

    # TODO(synk): downstream consumers that can index prefix/suffix themselves should
    # use ctx_only=True and skip re-writing the batch-invariant prefix/suffix B times.
    prompts = pl.pallas_call(
        assemble_kernel,
        out_shape=jax.ShapeDtypeStruct((B, n_cls, L, ctx_dim), out_dtype),
        # Batch is the innermost grid axis: prefix/suffix block indices are constant
        # across it, so Pallas skips re-fetching them for every batch element.
        grid=(n_tiles, B),
        in_specs=[
            pl.BlockSpec((None, n_ctx, ctx_dim), lambda j, b: (b, 0, 0)),      # ctx_shifted[b]
            pl.BlockSpec((tn, 1, ctx_dim), lambda j, b: (j, 0, 0)),            # token_prefix tile
            pl.BlockSpec((tn, suf_len, ctx_dim), lambda j, b: (j, 0, 0)),      # token_suffix tile
        ],
        out_specs=pl.BlockSpec((None, tn, L, ctx_dim), lambda j, b: (b, j, 0, 0)),
        compiler_params=pltpu.CompilerParams(
            dimension_semantics=("parallel", "parallel"),
            vmem_limit_bytes=vmem_limit),
    )(ctx_shifted, prefix, suffix)
    return prompts


def reference_forward(im_features, w1, b1, w2, b2, ctx, prefix, suffix):
    B = im_features.shape[0]
    n_ctx, ctx_dim = ctx.shape
    n_cls = prefix.shape[0]
    suf_len = suffix.shape[1]
    h = jnp.maximum(im_features @ w1 + b1, 0.0)
    bias = h @ w2 + b2                                      # (B, ctx_dim)
    ctx_shifted = ctx[None, :, :] + bias[:, None, :]        # (B, n_ctx, ctx_dim)
    ctx_e = jnp.broadcast_to(ctx_shifted[:, None], (B, n_cls, n_ctx, ctx_dim))
    pre_e = jnp.broadcast_to(prefix[None], (B, n_cls, 1, ctx_dim))
    suf_e = jnp.broadcast_to(suffix[None], (B, n_cls, suf_len, ctx_dim))
    return ctx_shifted, jnp.concatenate([pre_e, ctx_e, suf_e], axis=2)


if __name__ == "__main__":
    # Small, module-consistent shapes.
    B = 2            # batch of image features
    vis_dim = 128    # clip_model.visual.output_dim
    hidden = vis_dim // 16   # meta_net bottleneck = 8
    ctx_dim = 128    # clip_model.ln_final.weight.shape[0]
    n_ctx = 4        # learnable context tokens
    n_cls = 3        # number of classnames
    seq_len = 16     # tokenized prompt length (real CLIP uses 77)
    suf_len = seq_len - 1 - n_ctx

    key = jax.random.PRNGKey(0)
    ks = jax.random.split(key, 8)

    im_features = jax.random.normal(ks[0], (B, vis_dim), dtype=jnp.float32)

    # Deterministic synthetic parameters (module __init__ shapes).
    ctx = 0.02 * jax.random.normal(ks[1], (n_ctx, ctx_dim), dtype=jnp.float32)
    w1 = jax.random.normal(ks[2], (vis_dim, hidden), dtype=jnp.float32) / jnp.sqrt(vis_dim)
    b1 = 0.01 * jax.random.normal(ks[3], (1, hidden), dtype=jnp.float32)
    w2 = jax.random.normal(ks[4], (hidden, ctx_dim), dtype=jnp.float32) / jnp.sqrt(hidden)
    b2 = 0.01 * jax.random.normal(ks[5], (1, ctx_dim), dtype=jnp.float32)

    # TODO(synk): token_prefix/token_suffix come from CLIP's tokenizer + token_embedding;
    # here they are synthetic deterministic buffers of the same shapes.
    token_prefix = jax.random.normal(ks[6], (n_cls, 1, ctx_dim), dtype=jnp.float32)
    token_suffix = jax.random.normal(ks[7], (n_cls, suf_len, ctx_dim), dtype=jnp.float32)

    prompts = prompt_learner_forward(
        im_features, w1, b1, w2, b2, ctx, token_prefix, token_suffix)
    prompts = jax.block_until_ready(prompts)

    ctx_only = prompt_learner_forward(
        im_features, w1, b1, w2, b2, ctx, token_prefix, token_suffix, ctx_only=True)
    ctx_only = jax.block_until_ready(ctx_only)

    exp_ctx_shifted, expected = reference_forward(
        im_features, w1, b1, w2, b2, ctx, token_prefix, token_suffix)

    assert prompts.shape == (B, n_cls, seq_len, ctx_dim), prompts.shape
    assert ctx_only.shape == (B, n_ctx, ctx_dim), ctx_only.shape
    assert jnp.allclose(ctx_only, exp_ctx_shifted, atol=1e-5, rtol=1e-5), "ctx_only mismatch"
    assert jnp.allclose(prompts, expected, atol=1e-5, rtol=1e-5), "mismatch vs reference"
    print("KERNEL_OK")
</pallas_src>

<mosaic_0001>
module attributes {stable_mosaic.version = 11 : i64} {
  func.func @meta_shift_kernel(%arg0: i32, %arg1: memref<2x128xf32, #tpu.memory_space<vmem>>, %arg2: memref<128x8xf32, #tpu.memory_space<vmem>>, %arg3: memref<1x8xf32, #tpu.memory_space<vmem>>, %arg4: memref<8x128xf32, #tpu.memory_space<vmem>>, %arg5: memref<1x128xf32, #tpu.memory_space<vmem>>, %arg6: memref<4x128xf32, #tpu.memory_space<vmem>>, %arg7: memref<2x4x128xf32, #tpu.memory_space<vmem>>) attributes {dimension_semantics = [#tpu.dimension_semantics<arbitrary>], iteration_bounds = array<i64: 1>, scalar_prefetch = 0 : i64, scratch_operands = 0 : i64, tpu.core_type = #tpu.core_type<tc>, window_params = [{pipeline_mode = #tpu.pipeline_mode<synchronous>, transform_indices = @transform_0, window_bounds = array<i64: 2, 128>}, {pipeline_mode = #tpu.pipeline_mode<synchronous>, transform_indices = @transform_1, window_bounds = array<i64: 128, 8>}, {pipeline_mode = #tpu.pipeline_mode<synchronous>, transform_indices = @transform_2, window_bounds = array<i64: 1, 8>}, {pipeline_mode = #tpu.pipeline_mode<synchronous>, transform_indices = @transform_3, window_bounds = array<i64: 8, 128>}, {pipeline_mode = #tpu.pipeline_mode<synchronous>, transform_indices = @transform_4, window_bounds = array<i64: 1, 128>}, {pipeline_mode = #tpu.pipeline_mode<synchronous>, transform_indices = @transform_5, window_bounds = array<i64: 4, 128>}, {pipeline_mode = #tpu.pipeline_mode<synchronous>, transform_indices = @transform_6, window_bounds = array<i64: 2, 4, 128>}]} {
    %c0 = arith.constant 0 : index
    %c0_0 = arith.constant 0 : index
    %0 = vector.load %arg1[%c0, %c0_0] : memref<2x128xf32, #tpu.memory_space<vmem>>, vector<2x128xf32>
    %c0_1 = arith.constant 0 : index
    %c0_2 = arith.constant 0 : index
    %1 = vector.load %arg2[%c0_1, %c0_2] : memref<128x8xf32, #tpu.memory_space<vmem>>, vector<128x8xf32>
    %cst = arith.constant dense<0.000000e+00> : vector<2x8xf32>
    %2 = tpu.matmul %0, %1, %cst {dimension_numbers = #tpu.dot_dimension_numbers<[1], [0], [0], [1], [0, 0, 1, 1], [], []>} : vector<2x128xf32>, vector<128x8xf32>, vector<2x8xf32> -> vector<2x8xf32>
    %c0_3 = arith.constant 0 : index
    %c0_4 = arith.constant 0 : index
    %3 = vector.load %arg3[%c0_3, %c0_4] : memref<1x8xf32, #tpu.memory_space<vmem>>, vector<1x8xf32>
    %4 = vector.broadcast %3 : vector<1x8xf32> to vector<2x8xf32>
    %5 = arith.addf %2, %4 : vector<2x8xf32>
    %cst_5 = arith.constant 0.000000e+00 : f32
    %6 = vector.broadcast %cst_5 : f32 to vector<2x8xf32>
    %7 = arith.maximumf %5, %6 : vector<2x8xf32>
    %c0_6 = arith.constant 0 : index
    %c0_7 = arith.constant 0 : index
    %8 = vector.load %arg4[%c0_6, %c0_7] : memref<8x128xf32, #tpu.memory_space<vmem>>, vector<8x128xf32>
    %cst_8 = arith.constant dense<0.000000e+00> : vector<2x128xf32>
    %9 = tpu.matmul %7, %8, %cst_8 {dimension_numbers = #tpu.dot_dimension_numbers<[1], [0], [0], [1], [0, 0, 1, 1], [], []>} : vector<2x8xf32>, vector<8x128xf32>, vector<2x128xf32> -> vector<2x128xf32>
    %c0_9 = arith.constant 0 : index
    %c0_10 = arith.constant 0 : index
    %10 = vector.load %arg5[%c0_9, %c0_10] : memref<1x128xf32, #tpu.memory_space<vmem>>, vector<1x128xf32>
    %11 = vector.broadcast %10 : vector<1x128xf32> to vector<2x128xf32>
    %12 = arith.addf %9, %11 : vector<2x128xf32>
    %c0_11 = arith.constant 0 : index
    %c0_12 = arith.constant 0 : index
    %13 = vector.load %arg6[%c0_11, %c0_12] : memref<4x128xf32, #tpu.memory_space<vmem>>, vector<4x128xf32>
    %14 = vector.shape_cast %13 : vector<4x128xf32> to vector<1x4x128xf32>
    %15 = vector.shape_cast %12 : vector<2x128xf32> to vector<2x1x128xf32>
    %16 = vector.broadcast %14 : vector<1x4x128xf32> to vector<2x4x128xf32>
    %17 = vector.broadcast %15 : vector<2x1x128xf32> to vector<2x4x128xf32>
    %18 = arith.addf %16, %17 : vector<2x4x128xf32>
    %c0_13 = arith.constant 0 : index
    %c0_14 = arith.constant 0 : index
    %c0_15 = arith.constant 0 : index
    %19 = vector.load %arg7[%c0_13, %c0_14, %c0_15] : memref<2x4x128xf32, #tpu.memory_space<vmem>>, vector<2x4x128xf32>
    tpu.vector_store %arg7[%c0_13, %c0_14, %c0_15], %18 {strides = array<i32>} : memref<2x4x128xf32, #tpu.memory_space<vmem>>, vector<2x4x128xf32>,
    return
  }
  func.func @transform_0(%arg0: i32) -> (i32, i32) {
    %c0_i32 = arith.constant 0 : i32
    %c0_i32_0 = arith.constant 0 : i32
    %c0_i32_1 = arith.constant 0 : i32
    return %c0_i32, %c0_i32_0 : i32, i32
  }
  func.func @transform_1(%arg0: i32) -> (i32, i32) {
    %c0_i32 = arith.constant 0 : i32
    %c0_i32_0 = arith.constant 0 : i32
    %c0_i32_1 = arith.constant 0 : i32
    return %c0_i32, %c0_i32_0 : i32, i32
  }
  func.func @transform_2(%arg0: i32) -> (i32, i32) {
    %c0_i32 = arith.constant 0 : i32
    %c0_i32_0 = arith.constant 0 : i32
    %c0_i32_1 = arith.constant 0 : i32
    return %c0_i32, %c0_i32_0 : i32, i32
  }
  func.func @transform_3(%arg0: i32) -> (i32, i32) {
    %c0_i32 = arith.constant 0 : i32
    %c0_i32_0 = arith.constant 0 : i32
    %c0_i32_1 = arith.constant 0 : i32
    return %c0_i32, %c0_i32_0 : i32, i32
  }
  func.func @transform_4(%arg0: i32) -> (i32, i32) {
    %c0_i32 = arith.constant 0 : i32
    %c0_i32_0 = arith.constant 0 : i32
    %c0_i32_1 = arith.constant 0 : i32
    return %c0_i32, %c0_i32_0 : i32, i32
  }
  func.func @transform_5(%arg0: i32) -> (i32, i32) {
    %c0_i32 = arith.constant 0 : i32
    %c0_i32_0 = arith.constant 0 : i32
    %c0_i32_1 = arith.constant 0 : i32
    return %c0_i32, %c0_i32_0 : i32, i32
  }
  func.func @transform_6(%arg0: i32) -> (i32, i32, i32) {
    %c0_i32 = arith.constant 0 : i32
    %c0_i32_0 = arith.constant 0 : i32
    %c0_i32_1 = arith.constant 0 : i32
    %c0_i32_2 = arith.constant 0 : i32
    return %c0_i32, %c0_i32_0, %c0_i32_1 : i32, i32, i32
  }
}

</mosaic_0001>

<bundles_post_ra>
// kernel: tpu_custom_call.1
= control target key start
LH: loop header
LB: loop body
LE: loop exit
PB: predicated region body
PF: predicated region fallthrough
CT: control target
= control target key end

     0   :  { %v372_v3 = vmov 0.0|0.0   ;;  %vm373_vm0 = vmmov 0   ;;  %v374_v6 = vmov 0.0   ;;  %s489_s0 = inlined_call_operand.vmem [shape: f32[2,128], index: 0, kind: input, shape index: {}]   ;;  %s490_s1 = inlined_call_operand.vmem [shape: f32[128,8], index: 1, kind: input, shape index: {}]   ;;  %s491_s2 = inlined_call_operand.vmem [shape: f32[1,8], index: 2, kind: input, shape index: {}]   ;;  %s492_s3 = inlined_call_operand.vmem [shape: f32[8,128], index: 3, kind: input, shape index: {}]   ;;  %s493_s4 = inlined_call_operand.vmem [shape: f32[1,128], index: 4, kind: input, shape index: {}]   ;;  %s494_s5 = inlined_call_operand.vmem [shape: f32[4,128], index: 5, kind: input, shape index: {}]   ;;  %s495_s6 = inlined_call_operand.hbm [shape: f32[2,4,128], index: 6, kind: output, shape index: {}]  }
   0x1   :  { %v25_v0 = vld [vmem:[%s490_s1] sm:$0xff]  ;;  %v26_v1 = vld [vmem:[%s490_s1 + $0x8] sm:$0xff]  ;;  %v27_v2 = vld [vmem:[%s490_s1 + $0x10] sm:$0xff]  ;;  %317 = vmatprep.subr.bf16.mxu0 %v372_v3  ;;  %309 = vmatprep.mubr.msk.f32.mxu0 %vm373_vm0, %v374_v6 }
   0x2   :  { %v318_v4 = vpack.c.bf16 %v26_v1, %v25_v0  ;;  %v28_v5 = vld [vmem:[%s490_s1 + $0x18] sm:$0xff]  ;;  %312 = vmatprep.subr.mxu1 %v374_v6  ;;  %314 = vmatprep.mubr.msk.f32.mxu1 %vm373_vm0, %v374_v6  ;;  %v29_v8 = vld [vmem:[%s490_s1 + $0x20] sm:$0xff]  ;;  %v30_v9 = vld [vmem:[%s490_s1 + $0x28] sm:$0xff] }
   0x3   :  { %v321_v7 = vpack.c.bf16 %v28_v5, %v27_v2 }
   0x4   :  { %319 = vmatpush3.bf16.msra.mxu0 %v318_v4 }
   0x5   :  { %320 = vmatprep.subr.bf16.mxu0 %v372_v3 }
   0x6   :  { %11 = vsyncpa [#allocation3], 0  ;;  %v324_v10 = vpack.c.bf16 %v30_v9, %v29_v8  ;;  %v31_v11 = vld [vmem:[%s490_s1 + $0x30] sm:$0xff]  ;;  %v32_v12 = vld [vmem:[%s490_s1 + $0x38] sm:$0xff]  ;;  %vm127_vm1 = vcmask 64512   ;;  %v206_v35 = vlaneseq  ;;  %s376_s11 = smov [#allocation2]  }
   0x7   :  { %v327_v13 = vpack.c.bf16 %v32_v12, %v31_v11  ;;  %v33_v14 = vld [vmem:[%s490_s1 + $0x40] sm:$0xff]  ;;  %v34_v15 = vld [vmem:[%s490_s1 + $0x48] sm:$0xff]  ;;  %v35_v17 = vld [vmem:[%s490_s1 + $0x50] sm:$0xff]  ;;  %v375_v33 = vmov 1966171168   ;;  %s244_s12 = sshll.u32 %s376_s11, 4  ;;  %s245_s12 = int_to_ptr.vmem [resolvable:$true] %s244_s12 }
   0x8   :  { %322 = vmatpush3.bf16.msra.mxu0 %v321_v7  ;;  %v330_v16 = vpack.c.bf16 %v34_v15, %v33_v14  ;;  %v36_v18 = vld [vmem:[%s490_s1 + $0x58] sm:$0xff]  ;;  %v37_v20 = vld [vmem:[%s490_s1 + $0x60] sm:$0xff]  ;;  %v38_v21 = vld [vmem:[%s490_s1 + $0x68] sm:$0xff]  ;;  %v204_v34 = vunpack.c.l.s4 %v375_v33  ;;  %v207_v37 = vshrl.u32 %v206_v35, 7  ;;  %p353_p1 = scmp.lt.s32.totalorder %s245_s12, %s245_s12 }
   0x9   :  { %323 = vmatprep.subr.bf16.mxu0 %v372_v3  ;;  %v333_v19 = vpack.c.bf16 %v36_v18, %v35_v17  ;;  %v336_v22 = vpack.c.bf16 %v38_v21, %v37_v20  ;;  %v39_v23 = vld [vmem:[%s490_s1 + $0x70] sm:$0xff]  ;;  %v40_v24 = vld [vmem:[%s490_s1 + $0x78] sm:$0xff]  ;;  %v24_v26 = vld [vmem:[%s489_s0] sm:$0x3] }
   0xa   :  { %v339_v25 = vpack.c.bf16 %v40_v24, %v39_v23  ;;  %v119_v27 = vld [vmem:[%s492_s3] sm:$0xff]  ;;  %v205_v36 = vunpack.c.0.s8 %v204_v34  ;;  %v227_v44 = vsub.s32 0, %v207_v37 }
   0xb   :  { %313 = vmatpush3.msra.mxu1 %v119_v27  ;;  %v255_v28 = vld [vmem:[%s491_s2] ss:$0 sm:$0xff] }
   0xc   :  { %325 = vmatpush3.bf16.msra.mxu0 %v324_v10  ;;  %v256_v38 = vld [vmem:[%s493_s4] ss:$0 sm:$0xff]  ;;  %v208_v39 = vsub.s32 %v205_v36, %v207_v37  ;;  %s348_s4 = scalar_lea.vmem %s245_s12, 128 }
   0xd   :  { %326 = vmatprep.subr.bf16.mxu0 %v372_v3  ;;  %v201_v47 = vld [vmem:[%s494_s5] sm:$0xf]  ;;  %p349_p0 = scmp.ne.s32.totalorder %s245_s12, %s348_s4  ;;  %p354_p2 = scmp.lt.s32.totalorder %s348_s4, %s348_s4 }
   0xf   :  { %p355_p3 = por %p354_p2, %p353_p1 }
  0x10   :  { %328 = vmatpush3.bf16.msra.mxu0 %v327_v13 }
  0x11   :  { %329 = vmatprep.subr.bf16.mxu0 %v372_v3  ;;  %p356_p4 = pnand %p355_p3, %p349_p0 }
  0x14   :  { %331 = vmatpush3.bf16.msra.mxu0 %v330_v16 }
  0x15   :  { %332 = vmatprep.subr.bf16.mxu0 %v372_v3 }
  0x18   :  { %334 = vmatpush3.bf16.msra.mxu0 %v333_v19 }
  0x19   :  { %335 = vmatprep.subr.bf16.mxu0 %v372_v3 }
  0x1c   :  { %337 = vmatpush3.bf16.msra.mxu0 %v336_v22 }
  0x1d   :  { %338 = vmatprep.subr.bf16.mxu0 %v372_v3 }
  0x20   :  { %340 = vmatpush3.bf16.msra.mxu0 %v339_v25 }
  0x23   :  { %310 = vmatmul.mubr.f32.vlgmr.msra.gmra.mrb[0].mxu0 %v24_v26 }
  0xf6   :  { %v114_v29 = vpop.f32.mrb[0].mxu0 }
  0xf7   :  { %v115_v30 = vadd.f32 %v255_v28, %v114_v29  ;;  %v311_v31 = vpop.f32.mrb[1].mxu0 }
  0xf9   :  { %v118_v32 = vmax.f32 %v115_v30, 0.0 }
  0xfb   :  { %315 = vmatmul.mubr.msk.f32.vlgmr.msra.gmra.mrb[0].mxu1 %vm127_vm1, %v118_v32 }
 0x1ce   :  { %v197_v40 = vpop.f32.mrb[0].mxu1 }
 0x1cf   :  { %v198_v41 = vadd.f32 %v256_v38, %v197_v40  ;;  %v316_v42 = vpop.f32.mrb[1].mxu1 }
 0x1d1   :  { %v209_v43 = vrot.slane %v198_v41, %v208_v39 }
 0x1d3   :  { %v210_v45 = vcombine.high %v209_v43, %v209_v43  ;;  %v217_v46 = vrot.slane %v209_v43, %v208_v39 }
 0x1d5   :  { %v224_v48 = vrot.slane %v210_v45, %v208_v39  ;;  %v228_v49 = vrot.slane %v217_v46, %v227_v44 }
 0x1d7   :  { %v232_v50 = vrot.slane %v224_v48, %v227_v44  ;;  %v235_v51 = vadd.f32 %v228_v49, %v201_v47 }
 0x1d9   :  { %237 = vst [vmem:[#allocation2] sm:$0xf] %v235_v51  ;;  %v236_v52 = vadd.f32 %v232_v50, %v201_v47 }
 0x1db   :  { %238 = vst [vmem:[#allocation2 + $0x4] sm:$0xf] %v236_v52 }
 0x1dc   :  { %359 = shalt.err (!%p356_p4)
}
 0x1dd   :  { %s360_s5 = scalar_lea.hbm %s495_s6, 128 }
 0x1de   :  { %p361_p5 = scmp.ne.s32.totalorder %s495_s6, %s360_s5  ;;  %p364_p6 = scmp.lt.u32.totalorder %s360_s5, %s495_s6 }
 0x1e0   :  { %p366_p7 = pnand %p364_p6, %p361_p5 }
 0x1e2   :  { %369 = shalt.err (!%p366_p7)
}
 0x1e3   :  { %s377_s19 = smov 64   ;;  %s378_s20 = smov 4  }
 0x1e4   :  { %250 = dma.vmem_to_hbm [thread:$0]  %s245_s12, 128, %s495_s6, [#allocation3], %s377_s19, %s377_s19, %s378_s20  }
 0x1e5   :  { %370 = dma.done.wait [#allocation3], 128  }
 0x1e6   :  { %371 = vsyncadd [#allocation3], 4294967168 }
 0x1e7   :  { %254 = vsyncpa [#allocation3], 1 }

</bundles_post_ra>
